<compile_context>
chip_gen: v6e
topology: v6e:2x2x1
jax: 0.10.0
libtpu: 0.0.40
codegen_flags: <defaults>
</compile_context>

<pallas_src>
import jax
import jax.numpy as jnp
from jax.experimental import pallas as pl
from jax.experimental.pallas import tpu as pltpu

_LANES = 128                                # TPU lane width
_TARGET_BLOCK_BYTES = 4 * 1024 * 1024       # ~4 MiB per block buffer
_VMEM_LIMIT_BYTES = 48 * 1024 * 1024        # <= v7x 64 MiB physical VMEM
_XLA_FALLBACK_ELEMS = 1 << 15               # tiny tensors: fused XLA add wins


def _add_pos_rows_kernel(x_ref, pos_ref, o_ref):
    # x_ref: (1, tR, C)  one batch element's row tile
    # pos_ref: (tR, C)   positional tile; constant index_map over the inner B
    #                    grid axis keeps it resident across the batch loop
    # o_ref: (1, tR, C)
    o_ref[0] = x_ref[0].astype(o_ref.dtype) + pos_ref[...]


def _add_pos_batched_kernel(x_ref, pos_ref, o_ref):
    # x_ref: (bB, R, C)  several batch elements per block (MiB-scale DMAs)
    # pos_ref: (R, C)    whole positional slab, broadcast over the batch dim
    # o_ref: (bB, R, C)
    o_ref[...] = x_ref[...].astype(o_ref.dtype) + pos_ref[...]


def _pallas_add(x3, pos2, out_dtype):
    """x3: (B, R, C) lane-dense (C % 128 == 0); pos2: (R, C) in out_dtype."""
    B, R, C = x3.shape
    isz_o = jnp.dtype(out_dtype).itemsize
    isz_x = jnp.dtype(x3.dtype).itemsize

    # Rows per ~4 MiB block, rounded to a multiple of 16 sublanes (keeps bf16
    # sublane packing clean as well).
    t_rows = max(16, (_TARGET_BLOCK_BYTES // (C * isz_o)) // 16 * 16)

    cost = pl.CostEstimate(
        flops=B * R * C,
        transcendentals=0,
        bytes_accessed=B * R * C * (isz_x + isz_o) + R * C * isz_o,
    )
    common = dict(
        out_shape=jax.ShapeDtypeStruct((B, R, C), out_dtype),
        cost_estimate=cost,
    )

    if R <= t_rows:
        # Small/medium R: one block covers the whole (R, C) slab; fold batch
        # elements per block so each grid step still moves ~MiB of data.
        bB = max(1, min(B, _TARGET_BLOCK_BYTES // (R * C * isz_o)))
        return pl.pallas_call(
            _add_pos_batched_kernel,
            grid=(pl.cdiv(B, bB),),
            in_specs=[
                pl.BlockSpec((bB, R, C), lambda b: (b, 0, 0)),
                pl.BlockSpec((R, C), lambda b: (0, 0)),
            ],
            out_specs=pl.BlockSpec((bB, R, C), lambda b: (b, 0, 0)),
            compiler_params=pltpu.CompilerParams(
                dimension_semantics=("parallel",),
                vmem_limit_bytes=_VMEM_LIMIT_BYTES,
            ),
            **common,
        )(x3, pos2)

    # Large R: tile over rows (outer, megacore-parallel) with B innermost so
    # the positional tile is fetched once per row tile and reused across B.
    return pl.pallas_call(
        _add_pos_rows_kernel,
        grid=(pl.cdiv(R, t_rows), B),
        in_specs=[
            pl.BlockSpec((1, t_rows, C), lambda r, b: (b, r, 0)),
            pl.BlockSpec((t_rows, C), lambda r, b: (r, 0)),
        ],
        out_specs=pl.BlockSpec((1, t_rows, C), lambda r, b: (b, r, 0)),
        compiler_params=pltpu.CompilerParams(
            dimension_semantics=("parallel", "arbitrary"),
            vmem_limit_bytes=_VMEM_LIMIT_BYTES,
        ),
        **common,
    )(x3, pos2)


@jax.jit
def _encode_pallas_native(x, pos_table):
    """E % 128 == 0: tile the native (B, S, E) layout — no reshape at all."""
    B, S, E = x.shape
    out_dtype = jnp.promote_types(x.dtype, pos_table.dtype)
    pos = jax.lax.slice(pos_table, (0, 0), (S, E)).astype(out_dtype)
    return _pallas_add(x, pos, out_dtype)


@jax.jit
def _encode_pallas_flat(x, pos_table):
    """E not a lane multiple but (S*E) % 128 == 0: lane-dense flatten path."""
    B, S, E = x.shape
    out_dtype = jnp.promote_types(x.dtype, pos_table.dtype)
    pos = jax.lax.slice(pos_table, (0, 0), (S, E)).astype(out_dtype)
    R = (S * E) // _LANES
    # TODO(synk): for E < 128 this flatten may be a physical relayout under the
    # TPU (8,128) tiling; it is still preferable to masked sub-128-lane stores,
    # but confirm in the HLO that XLA does not insert extra copy fusions.
    x3 = jnp.reshape(x, (B, R, _LANES))
    pos2 = jnp.reshape(pos, (R, _LANES))
    out3 = _pallas_add(x3, pos2, out_dtype)
    return jnp.reshape(out3, (B, S, E))


@jax.jit
def _encode_xla(x, pos_table):
    """Fallback: tiny tensors or shapes that can't be made lane-dense."""
    S, E = x.shape[1], x.shape[2]
    out_dtype = jnp.promote_types(x.dtype, pos_table.dtype)
    pos = jax.lax.slice(pos_table, (0, 0), (S, E)).astype(out_dtype)
    return x.astype(out_dtype) + pos[None, :, :]


def _apply_positional_encoding_to_one(x: jax.Array, pos_table: jax.Array) -> jax.Array:
    if x.ndim != 3 or x.shape[2] != pos_table.shape[1]:
        raise ValueError(
            f"Input tensor shape error. Expected (B, S, {pos_table.shape[1]}), got {x.shape}"
        )
    B, S, E = x.shape
    if S > pos_table.shape[0]:
        raise ValueError(f"Input seq_len ({S}) > max_seq_len ({pos_table.shape[0]}).")

    if B * S * E < _XLA_FALLBACK_ELEMS:
        return _encode_xla(x, pos_table)          # launch cost dominates -> fuse in XLA
    if E % _LANES == 0:
        return _encode_pallas_native(x, pos_table)  # lane-dense as-is, no reshape
    if (S * E) % _LANES == 0:
        return _encode_pallas_flat(x, pos_table)    # lane-dense via flatten
    return _encode_xla(x, pos_table)


class PositionalEncoder:
    """JAX/Pallas port of the PyTorch PositionalEncoder module."""

    def __init__(self, max_seq_len: int, embedding_dim: int, *, key=None):
        self.max_seq_len = max_seq_len
        self.embedding_dim = embedding_dim
        if key is None:
            key = jax.random.PRNGKey(0)
        # nn.Embedding default init: weights ~ N(0, 1)
        self.position_embeddings = jax.random.normal(
            key, (max_seq_len, embedding_dim), dtype=jnp.float32
        )

    def __call__(self, *tensors):
        if not tensors:
            return tuple()
        return tuple(
            _apply_positional_encoding_to_one(x, self.position_embeddings)
            for x in tensors
        )


if __name__ == "__main__":
    key = jax.random.PRNGKey(0)
    k_a, k_b, k_c, k1, k2, k3, k4 = jax.random.split(key, 7)

    # --- Test A: native lane-dense Pallas path (E % 128 == 0), f32 and bf16 ---
    enc_a = PositionalEncoder(max_seq_len=128, embedding_dim=256, key=k_a)
    xa1 = jax.random.normal(k1, (2, 128, 256), dtype=jnp.float32)
    xa2 = jax.random.normal(k2, (2, 64, 256), dtype=jnp.bfloat16)
    oa1, oa2 = enc_a(xa1, xa2)
    jax.block_until_ready((oa1, oa2))
    ra1 = xa1 + enc_a.position_embeddings[:128][None]
    ra2 = xa2.astype(jnp.float32) + enc_a.position_embeddings[:64][None]
    assert oa1.dtype == ra1.dtype and oa2.dtype == jnp.float32
    assert jnp.allclose(oa1, ra1, atol=1e-6), "mismatch: native path f32"
    assert jnp.allclose(oa2, ra2, atol=1e-6), "mismatch: native path bf16 promotion"

    # --- Test B: flatten Pallas path (E < 128, (S*E) % 128 == 0) ---
    enc_b = PositionalEncoder(max_seq_len=256, embedding_dim=64, key=k_b)
    xb = jax.random.normal(k3, (4, 256, 64), dtype=jnp.float32)
    (ob,) = enc_b(xb)
    jax.block_until_ready(ob)
    rb = xb + enc_b.position_embeddings[:256][None]
    assert ob.shape == rb.shape and ob.dtype == rb.dtype
    assert jnp.allclose(ob, rb, atol=1e-6), "mismatch: flatten path"

    # --- Test C: tiny tensor -> fused XLA fallback ---
    enc_c = PositionalEncoder(max_seq_len=16, embedding_dim=32, key=k_c)
    xc = jax.random.normal(k4, (2, 8, 32), dtype=jnp.float32)
    (oc,) = enc_c(xc)
    jax.block_until_ready(oc)
    rc = xc + enc_c.position_embeddings[:8][None]
    assert jnp.allclose(oc, rc, atol=1e-6), "mismatch: tiny fallback"

    print("KERNEL_OK")
</pallas_src>

<mosaic_0001>
module attributes {stable_mosaic.version = 11 : i64} {
  func.func @_add_pos_batched_kernel(%arg0: i32, %arg1: memref<2x128x256xf32, #tpu.memory_space<vmem>>, %arg2: memref<128x256xf32, #tpu.memory_space<vmem>>, %arg3: memref<2x128x256xf32, #tpu.memory_space<vmem>>) attributes {dimension_semantics = [#tpu.dimension_semantics<parallel>], iteration_bounds = array<i64: 1>, scalar_prefetch = 0 : i64, scratch_operands = 0 : i64, tpu.core_type = #tpu.core_type<tc>, window_params = [{transform_indices = @transform_0, window_bounds = array<i64: 2, 128, 256>}, {pipeline_mode = #tpu.pipeline_mode<synchronous>, transform_indices = @transform_1, window_bounds = array<i64: 128, 256>}, {transform_indices = @transform_2, window_bounds = array<i64: 2, 128, 256>}]} {
    %c0 = arith.constant 0 : index
    %c0_0 = arith.constant 0 : index
    %c0_1 = arith.constant 0 : index
    %0 = vector.load %arg1[%c0, %c0_0, %c0_1] : memref<2x128x256xf32, #tpu.memory_space<vmem>>, vector<2x128x256xf32>
    %c0_2 = arith.constant 0 : index
    %c0_3 = arith.constant 0 : index
    %1 = vector.load %arg2[%c0_2, %c0_3] : memref<128x256xf32, #tpu.memory_space<vmem>>, vector<128x256xf32>
    %2 = vector.shape_cast %1 : vector<128x256xf32> to vector<1x128x256xf32>
    %3 = vector.broadcast %2 : vector<1x128x256xf32> to vector<2x128x256xf32>
    %4 = arith.addf %0, %3 : vector<2x128x256xf32>
    %c0_4 = arith.constant 0 : index
    %c0_5 = arith.constant 0 : index
    %c0_6 = arith.constant 0 : index
    %5 = vector.load %arg3[%c0_4, %c0_5, %c0_6] : memref<2x128x256xf32, #tpu.memory_space<vmem>>, vector<2x128x256xf32>
    tpu.vector_store %arg3[%c0_4, %c0_5, %c0_6], %4 {strides = array<i32>} : memref<2x128x256xf32, #tpu.memory_space<vmem>>, vector<2x128x256xf32>,
    return
  }
  func.func @transform_0(%arg0: i32) -> (i32, i32, i32) {
    %c0_i32 = arith.constant 0 : i32
    %c0_i32_0 = arith.constant 0 : i32
    %c0_i32_1 = arith.constant 0 : i32
    return %arg0, %c0_i32, %c0_i32_0 : i32, i32, i32
  }
  func.func @transform_1(%arg0: i32) -> (i32, i32) {
    %c0_i32 = arith.constant 0 : i32
    %c0_i32_0 = arith.constant 0 : i32
    %c0_i32_1 = arith.constant 0 : i32
    return %c0_i32, %c0_i32_0 : i32, i32
  }
  func.func @transform_2(%arg0: i32) -> (i32, i32, i32) {
    %c0_i32 = arith.constant 0 : i32
    %c0_i32_0 = arith.constant 0 : i32
    %c0_i32_1 = arith.constant 0 : i32
    return %arg0, %c0_i32, %c0_i32_0 : i32, i32, i32
  }
}

</mosaic_0001>

<bundles_post_ra>
// kernel: _encode_pallas_native.1
= control target key start
LH: loop header
LB: loop body
LE: loop exit
PB: predicated region body
PF: predicated region fallthrough
CT: control target
= control target key end

     0   :  { %7 = vsyncpa [#allocation3], 0  ;;  %s519_s0 = inlined_call_operand.hbm [shape: f32[2,128,256], index: 0, kind: input, shape index: {}]   ;;  %s520_s1 = inlined_call_operand.hbm [shape: f32[128,256], index: 1, kind: input, shape index: {}]   ;;  %s521_s2 = inlined_call_operand.hbm [shape: f32[2,128,256], index: 2, kind: output, shape index: {}]  }
   0x1   :  { %8 = vsyncpa [#allocation6], 0 }
   0x2   :  { %9 = vsyncpa [#allocation4], 0  ;;  %s353_s9 = smov [#allocation2]  }
   0x3   :  { %s15_s10 = sshll.u32 %s353_s9, 4  ;;  %s16_s10 = int_to_ptr.vmem [resolvable:$true] %s15_s10 }
   0x4   :  { %s295_s11 = scalar_lea.vmem %s16_s10, 8192  ;;  %p300_p1 = scmp.lt.s32.totalorder %s16_s10, %s16_s10 }
   0x5   :  { %p296_p0 = scmp.ne.s32.totalorder %s16_s10, %s295_s11  ;;  %p301_p2 = scmp.lt.s32.totalorder %s295_s11, %s295_s11 }
   0x7   :  { %p302_p3 = por %p301_p2, %p300_p1 }
   0x9   :  { %p303_p4 = pnand %p302_p3, %p296_p0 }
   0xb   :  { %306 = shalt.err (!%p303_p4)
}
   0xc   :  { %s354_s12 = smov 256   ;;  %s355_s13 = smov 16  }
   0xd   :  { %21 = dma.hbm_to_vmem [thread:$0]  %s519_s0, 8192, %s16_s10, [#allocation3], %s354_s12, %s354_s12, %s355_s13  }
   0xe   :  { %s356_s16 = smov [#allocation5]  }
   0xf   :  { %s27_s17 = sshll.u32 %s356_s16, 4  ;;  %s28_s17 = int_to_ptr.vmem [resolvable:$true] %s27_s17 }
  0x10   :  { %s315_s18 = scalar_lea.vmem %s28_s17, 4096  ;;  %p320_p6 = scmp.lt.s32.totalorder %s28_s17, %s28_s17 }
  0x11   :  { %p316_p5 = scmp.ne.s32.totalorder %s28_s17, %s315_s18  ;;  %p321_p7 = scmp.lt.s32.totalorder %s315_s18, %s315_s18 }
  0x13   :  { %p322_p8 = por %p321_p7, %p320_p6 }
  0x15   :  { %p323_p9 = pnand %p322_p8, %p316_p5 }
  0x17   :  { %326 = shalt.err (!%p323_p9)
}
  0x18   :  { %33 = dma.hbm_to_vmem [thread:$0]  %s520_s1, 4096, %s28_s17, [#allocation6], %s354_s12, %s354_s12, %s355_s13  }
  0x19   :  { %347 = dma.done.wait [#allocation3], 8192  }
  0x1a   :  { %348 = vsyncadd [#allocation3], 4294959104 }
  0x1b   :  { %349 = dma.done.wait [#allocation6], 4096  }
  0x1c   :  { %350 = vsyncadd [#allocation6], 4294963200  ;;  %v40_v0 = vld [vmem:[#allocation2] sm:$0xff]  ;;  %v41_v2 = vld [vmem:[#allocation2 + $0x8] sm:$0xff]  ;;  %s357_s0 = smov [#allocation7]  }
  0x1d   :  { %v385_v1 = vld [vmem:[#allocation5] sm:$0xff]  ;;  %v388_v4 = vld [vmem:[#allocation5 + $0x8] sm:$0xff]  ;;  %v42_v5 = vld [vmem:[#allocation2 + $0x10] sm:$0xff]  ;;  %s269_s1 = sshll.u32 %s357_s0, 4  ;;  %s270_s1 = int_to_ptr.vmem [resolvable:$true] %s269_s1 }
  0x1e   :  { %v136_v3 = vadd.f32 %v385_v1, %v40_v0  ;;  %v390_v6 = vld [vmem:[#allocation5 + $0x10] sm:$0xff]  ;;  %v137_v7 = vadd.f32 %v388_v4, %v41_v2  ;;  %v43_v9 = vld [vmem:[#allocation2 + $0x18] sm:$0xff]  ;;  %v44_v11 = vld [vmem:[#allocation2 + $0x20] sm:$0xff]  ;;  %s327_s21 = scalar_lea.vmem %s270_s1, 8192  ;;  %p332_p11 = scmp.lt.s32.totalorder %s270_s1, %s270_s1 }
  0x1f   :  { %v138_v8 = vadd.f32 %v390_v6, %v42_v5  ;;  %v394_v10 = vld [vmem:[#allocation5 + $0x18] sm:$0xff]  ;;  %v397_v13 = vld [vmem:[#allocation5 + $0x20] sm:$0xff]  ;;  %v45_v14 = vld [vmem:[#allocation2 + $0x28] sm:$0xff]  ;;  %p328_p10 = scmp.ne.s32.totalorder %s270_s1, %s327_s21  ;;  %p333_p12 = scmp.lt.s32.totalorder %s327_s21, %s327_s21 }
  0x20   :  { %200 = vst [vmem:[#allocation7] sm:$0xff] %v136_v3  ;;  %v139_v12 = vadd.f32 %v394_v10, %v43_v9  ;;  %v399_v15 = vld [vmem:[#allocation5 + $0x28] sm:$0xff]  ;;  %201 = vst [vmem:[#allocation7 + $0x8] sm:$0xff] %v137_v7  ;;  %v140_v16 = vadd.f32 %v397_v13, %v44_v11  ;;  %v46_v18 = vld [vmem:[#allocation2 + $0x30] sm:$0xff] }
  0x21   :  { %202 = vst [vmem:[#allocation7 + $0x10] sm:$0xff] %v138_v8  ;;  %v141_v17 = vadd.f32 %v399_v15, %v45_v14  ;;  %v403_v19 = vld [vmem:[#allocation5 + $0x30] sm:$0xff]  ;;  %v47_v20 = vld [vmem:[#allocation2 + $0x38] sm:$0xff]  ;;  %v48_v23 = vld [vmem:[#allocation2 + $0x40] sm:$0xff]  ;;  %p334_p13 = por %p333_p12, %p332_p11 }
  0x22   :  { %203 = vst [vmem:[#allocation7 + $0x18] sm:$0xff] %v139_v12  ;;  %v142_v21 = vadd.f32 %v403_v19, %v46_v18  ;;  %v406_v22 = vld [vmem:[#allocation5 + $0x38] sm:$0xff]  ;;  %v408_v24 = vld [vmem:[#allocation5 + $0x40] sm:$0xff]  ;;  %204 = vst [vmem:[#allocation7 + $0x20] sm:$0xff] %v140_v16 }
  0x23   :  { %205 = vst [vmem:[#allocation7 + $0x28] sm:$0xff] %v141_v17  ;;  %v143_v25 = vadd.f32 %v406_v22, %v47_v20  ;;  %v144_v26 = vadd.f32 %v408_v24, %v48_v23  ;;  %v49_v27 = vld [vmem:[#allocation2 + $0x48] sm:$0xff]  ;;  %v50_v29 = vld [vmem:[#allocation2 + $0x50] sm:$0xff]  ;;  %v51_v32 = vld [vmem:[#allocation2 + $0x58] sm:$0xff]  ;;  %p335_p0 = pnand %p334_p13, %p328_p10 }
  0x24   :  { %v412_v28 = vld [vmem:[#allocation5 + $0x48] sm:$0xff]  ;;  %206 = vst [vmem:[#allocation7 + $0x30] sm:$0xff] %v142_v21  ;;  %v415_v31 = vld [vmem:[#allocation5 + $0x50] sm:$0xff]  ;;  %v417_v33 = vld [vmem:[#allocation5 + $0x58] sm:$0xff] }
  0x25   :  { %v145_v30 = vadd.f32 %v412_v28, %v49_v27  ;;  %207 = vst [vmem:[#allocation7 + $0x38] sm:$0xff] %v143_v25  ;;  %208 = vst [vmem:[#allocation7 + $0x40] sm:$0xff] %v144_v26  ;;  %v146_v34 = vadd.f32 %v415_v31, %v50_v29  ;;  %v147_v35 = vadd.f32 %v417_v33, %v51_v32  ;;  %v52_v36 = vld [vmem:[#allocation2 + $0x60] sm:$0xff]  ;;  %v53_v38 = vld [vmem:[#allocation2 + $0x68] sm:$0xff] }
  0x26   :  { %v421_v37 = vld [vmem:[#allocation5 + $0x60] sm:$0xff]  ;;  %v424_v40 = vld [vmem:[#allocation5 + $0x68] sm:$0xff]  ;;  %v54_v41 = vld [vmem:[#allocation2 + $0x70] sm:$0xff] }
  0x27   :  { %209 = vst [vmem:[#allocation7 + $0x48] sm:$0xff] %v145_v30  ;;  %v148_v39 = vadd.f32 %v421_v37, %v52_v36  ;;  %v426_v42 = vld [vmem:[#allocation5 + $0x70] sm:$0xff]  ;;  %210 = vst [vmem:[#allocation7 + $0x50] sm:$0xff] %v146_v34  ;;  %v149_v43 = vadd.f32 %v424_v40, %v53_v38  ;;  %v55_v45 = vld [vmem:[#allocation2 + $0x78] sm:$0xff] }
  0x28   :  { %211 = vst [vmem:[#allocation7 + $0x58] sm:$0xff] %v147_v35  ;;  %v150_v44 = vadd.f32 %v426_v42, %v54_v41  ;;  %v430_v46 = vld [vmem:[#allocation5 + $0x78] sm:$0xff]  ;;  %v56_v47 = vld [vmem:[#allocation2 + $0x80] sm:$0xff]  ;;  %v57_v50 = vld [vmem:[#allocation2 + $0x88] sm:$0xff] }
  0x29   :  { %212 = vst [vmem:[#allocation7 + $0x60] sm:$0xff] %v148_v39  ;;  %v151_v48 = vadd.f32 %v430_v46, %v55_v45  ;;  %v433_v49 = vld [vmem:[#allocation5 + $0x80] sm:$0xff]  ;;  %v435_v51 = vld [vmem:[#allocation5 + $0x88] sm:$0xff]  ;;  %213 = vst [vmem:[#allocation7 + $0x68] sm:$0xff] %v149_v43 }
  0x2a   :  { %214 = vst [vmem:[#allocation7 + $0x70] sm:$0xff] %v150_v44  ;;  %v152_v52 = vadd.f32 %v433_v49, %v56_v47  ;;  %v153_v53 = vadd.f32 %v435_v51, %v57_v50  ;;  %v58_v54 = vld [vmem:[#allocation2 + $0x90] sm:$0xff]  ;;  %v59_v56 = vld [vmem:[#allocation2 + $0x98] sm:$0xff]  ;;  %v60_v59 = vld [vmem:[#allocation2 + $0xa0] sm:$0xff] }
  0x2b   :  { %v439_v55 = vld [vmem:[#allocation5 + $0x90] sm:$0xff]  ;;  %215 = vst [vmem:[#allocation7 + $0x78] sm:$0xff] %v151_v48  ;;  %v442_v58 = vld [vmem:[#allocation5 + $0x98] sm:$0xff]  ;;  %v444_v60 = vld [vmem:[#allocation5 + $0xa0] sm:$0xff] }
  0x2c   :  { %v154_v57 = vadd.f32 %v439_v55, %v58_v54  ;;  %216 = vst [vmem:[#allocation7 + $0x80] sm:$0xff] %v152_v52  ;;  %217 = vst [vmem:[#allocation7 + $0x88] sm:$0xff] %v153_v53  ;;  %v155_v61 = vadd.f32 %v442_v58, %v59_v56  ;;  %v156_v62 = vadd.f32 %v444_v60, %v60_v59  ;;  %v61_v63 = vld [vmem:[#allocation2 + $0xa8] sm:$0xff]  ;;  %v62_v2 = vld [vmem:[#allocation2 + $0xb0] sm:$0xff] }
  0x2d   :  { %v448_v0 = vld [vmem:[#allocation5 + $0xa8] sm:$0xff]  ;;  %v451_v5 = vld [vmem:[#allocation5 + $0xb0] sm:$0xff]  ;;  %v63_v7 = vld [vmem:[#allocation2 + $0xb8] sm:$0xff] }
  0x2e   :  { %218 = vst [vmem:[#allocation7 + $0x90] sm:$0xff] %v154_v57  ;;  %v157_v3 = vadd.f32 %v448_v0, %v61_v63  ;;  %v453_v8 = vld [vmem:[#allocation5 + $0xb8] sm:$0xff]  ;;  %219 = vst [vmem:[#allocation7 + $0x98] sm:$0xff] %v155_v61  ;;  %v158_v9 = vadd.f32 %v451_v5, %v62_v2  ;;  %v64_v12 = vld [vmem:[#allocation2 + $0xc0] sm:$0xff] }
  0x2f   :  { %220 = vst [vmem:[#allocation7 + $0xa0] sm:$0xff] %v156_v62  ;;  %v159_v11 = vadd.f32 %v453_v8, %v63_v7  ;;  %v457_v14 = vld [vmem:[#allocation5 + $0xc0] sm:$0xff]  ;;  %v65_v16 = vld [vmem:[#allocation2 + $0xc8] sm:$0xff]  ;;  %v66_v20 = vld [vmem:[#allocation2 + $0xd0] sm:$0xff] }
  0x30   :  { %221 = vst [vmem:[#allocation7 + $0xa8] sm:$0xff] %v157_v3  ;;  %v160_v17 = vadd.f32 %v457_v14, %v64_v12  ;;  %v460_v18 = vld [vmem:[#allocation5 + $0xc8] sm:$0xff]  ;;  %v462_v21 = vld [vmem:[#allocation5 + $0xd0] sm:$0xff]  ;;  %222 = vst [vmem:[#allocation7 + $0xb0] sm:$0xff] %v158_v9 }
  0x31   :  { %223 = vst [vmem:[#allocation7 + $0xb8] sm:$0xff] %v159_v11  ;;  %v161_v23 = vadd.f32 %v460_v18, %v65_v16  ;;  %v162_v25 = vadd.f32 %v462_v21, %v66_v20  ;;  %v67_v26 = vld [vmem:[#allocation2 + $0xd8] sm:$0xff]  ;;  %v68_v29 = vld [vmem:[#allocation2 + $0xe0] sm:$0xff]  ;;  %v69_v34 = vld [vmem:[#allocation2 + $0xe8] sm:$0xff] }
  0x32   :  { %v466_v27 = vld [vmem:[#allocation5 + $0xd8] sm:$0xff]  ;;  %224 = vst [vmem:[#allocation7 + $0xc0] sm:$0xff] %v160_v17  ;;  %v469_v32 = vld [vmem:[#allocation5 + $0xe0] sm:$0xff]  ;;  %v471_v35 = vld [vmem:[#allocation5 + $0xe8] sm:$0xff] }
  0x33   :  { %v163_v30 = vadd.f32 %v466_v27, %v67_v26  ;;  %225 = vst [vmem:[#allocation7 + $0xc8] sm:$0xff] %v161_v23  ;;  %226 = vst [vmem:[#allocation7 + $0xd0] sm:$0xff] %v162_v25  ;;  %v164_v36 = vadd.f32 %v469_v32, %v68_v29  ;;  %v165_v38 = vadd.f32 %v471_v35, %v69_v34  ;;  %v70_v39 = vld [vmem:[#allocation2 + $0xf0] sm:$0xff]  ;;  %v71_v43 = vld [vmem:[#allocation2 + $0xf8] sm:$0xff] }
  0x34   :  { %v475_v41 = vld [vmem:[#allocation5 + $0xf0] sm:$0xff]  ;;  %v478_v45 = vld [vmem:[#allocation5 + $0xf8] sm:$0xff]  ;;  %v72_v47 = vld [vmem:[#allocation2 + $0x100] sm:$0xff] }
  0x35   :  { %227 = vst [vmem:[#allocation7 + $0xd8] sm:$0xff] %v163_v30  ;;  %v166_v44 = vadd.f32 %v475_v41, %v70_v39  ;;  %v73_v48 = vld [vmem:[#allocation2 + $0x108] sm:$0xff]  ;;  %228 = vst [vmem:[#allocation7 + $0xe0] sm:$0xff] %v164_v36  ;;  %v167_v50 = vadd.f32 %v478_v45, %v71_v43  ;;  %v168_v52 = vadd.f32 %v385_v1, %v72_v47  ;;  %v74_v54 = vld [vmem:[#allocation2 + $0x110] sm:$0xff] }
  0x36   :  { %229 = vst [vmem:[#allocation7 + $0xe8] sm:$0xff] %v165_v38  ;;  %v169_v53 = vadd.f32 %v388_v4, %v73_v48  ;;  %v75_v56 = vld [vmem:[#allocation2 + $0x118] sm:$0xff]  ;;  %v76_v57 = vld [vmem:[#allocation2 + $0x120] sm:$0xff]  ;;  %v170_v59 = vadd.f32 %v390_v6, %v74_v54  ;;  %v77_v63 = vld [vmem:[#allocation2 + $0x128] sm:$0xff] }
  0x37   :  { %230 = vst [vmem:[#allocation7 + $0xf0] sm:$0xff] %v166_v44  ;;  %v171_v61 = vadd.f32 %v394_v10, %v75_v56  ;;  %v172_v62 = vadd.f32 %v397_v13, %v76_v57  ;;  %v78_v2 = vld [vmem:[#allocation2 + $0x130] sm:$0xff]  ;;  %v79_v3 = vld [vmem:[#allocation2 + $0x138] sm:$0xff]  ;;  %231 = vst [vmem:[#allocation7 + $0xf8] sm:$0xff] %v167_v50  ;;  %v173_v1 = vadd.f32 %v399_v15, %v77_v63 }
  0x38   :  { %232 = vst [vmem:[#allocation7 + $0x100] sm:$0xff] %v168_v52  ;;  %233 = vst [vmem:[#allocation7 + $0x108] sm:$0xff] %v169_v53  ;;  %v174_v4 = vadd.f32 %v403_v19, %v78_v2  ;;  %v175_v7 = vadd.f32 %v406_v22, %v79_v3  ;;  %v80_v9 = vld [vmem:[#allocation2 + $0x140] sm:$0xff]  ;;  %v81_v11 = vld [vmem:[#allocation2 + $0x148] sm:$0xff] }
  0x39   :  { %v82_v12 = vld [vmem:[#allocation2 + $0x150] sm:$0xff]  ;;  %234 = vst [vmem:[#allocation7 + $0x110] sm:$0xff] %v170_v59  ;;  %235 = vst [vmem:[#allocation7 + $0x118] sm:$0xff] %v171_v61  ;;  %v176_v6 = vadd.f32 %v408_v24, %v80_v9  ;;  %v177_v10 = vadd.f32 %v412_v28, %v81_v11  ;;  %v83_v16 = vld [vmem:[#allocation2 + $0x158] sm:$0xff] }
  0x3a   :  { %236 = vst [vmem:[#allocation7 + $0x120] sm:$0xff] %v172_v62  ;;  %v178_v13 = vadd.f32 %v415_v31, %v82_v12  ;;  %v84_v17 = vld [vmem:[#allocation2 + $0x160] sm:$0xff]  ;;  %v85_v20 = vld [vmem:[#allocation2 + $0x168] sm:$0xff]  ;;  %237 = vst [vmem:[#allocation7 + $0x128] sm:$0xff] %v173_v1  ;;  %v179_v15 = vadd.f32 %v417_v33, %v83_v16 }
  0x3b   :  { %238 = vst [vmem:[#allocation7 + $0x130] sm:$0xff] %v174_v4  ;;  %239 = vst [vmem:[#allocation7 + $0x138] sm:$0xff] %v175_v7  ;;  %v180_v19 = vadd.f32 %v421_v37, %v84_v17  ;;  %v181_v22 = vadd.f32 %v424_v40, %v85_v20  ;;  %v86_v23 = vld [vmem:[#allocation2 + $0x170] sm:$0xff]  ;;  %v87_v25 = vld [vmem:[#allocation2 + $0x178] sm:$0xff] }
  0x3c   :  { %v88_v26 = vld [vmem:[#allocation2 + $0x180] sm:$0xff]  ;;  %240 = vst [vmem:[#allocation7 + $0x140] sm:$0xff] %v176_v6  ;;  %241 = vst [vmem:[#allocation7 + $0x148] sm:$0xff] %v177_v10  ;;  %v182_v24 = vadd.f32 %v426_v42, %v86_v23  ;;  %v183_v28 = vadd.f32 %v430_v46, %v87_v25  ;;  %v89_v29 = vld [vmem:[#allocation2 + $0x188] sm:$0xff] }
  0x3d   :  { %242 = vst [vmem:[#allocation7 + $0x150] sm:$0xff] %v178_v13  ;;  %v184_v31 = vadd.f32 %v433_v49, %v88_v26  ;;  %v90_v30 = vld [vmem:[#allocation2 + $0x190] sm:$0xff]  ;;  %v91_v34 = vld [vmem:[#allocation2 + $0x198] sm:$0xff]  ;;  %243 = vst [vmem:[#allocation7 + $0x158] sm:$0xff] %v179_v15  ;;  %v185_v33 = vadd.f32 %v435_v51, %v89_v29 }
  0x3e   :  { %244 = vst [vmem:[#allocation7 + $0x160] sm:$0xff] %v180_v19  ;;  %245 = vst [vmem:[#allocation7 + $0x168] sm:$0xff] %v181_v22  ;;  %v186_v37 = vadd.f32 %v439_v55, %v90_v30  ;;  %v187_v40 = vadd.f32 %v442_v58, %v91_v34  ;;  %v92_v36 = vld [vmem:[#allocation2 + $0x1a0] sm:$0xff]  ;;  %v93_v38 = vld [vmem:[#allocation2 + $0x1a8] sm:$0xff] }
  0x3f   :  { %v94_v39 = vld [vmem:[#allocation2 + $0x1b0] sm:$0xff]  ;;  %246 = vst [vmem:[#allocation7 + $0x170] sm:$0xff] %v182_v24  ;;  %247 = vst [vmem:[#allocation7 + $0x178] sm:$0xff] %v183_v28  ;;  %v188_v42 = vadd.f32 %v444_v60, %v92_v36  ;;  %v189_v46 = vadd.f32 %v448_v0, %v93_v38  ;;  %v95_v43 = vld [vmem:[#allocation2 + $0x1b8] sm:$0xff] }
  0x40   :  { %248 = vst [vmem:[#allocation7 + $0x180] sm:$0xff] %v184_v31  ;;  %v190_v49 = vadd.f32 %v451_v5, %v94_v39  ;;  %v96_v44 = vld [vmem:[#allocation2 + $0x1c0] sm:$0xff]  ;;  %v97_v47 = vld [vmem:[#allocation2 + $0x1c8] sm:$0xff]  ;;  %249 = vst [vmem:[#allocation7 + $0x188] sm:$0xff] %v185_v33  ;;  %v191_v51 = vadd.f32 %v453_v8, %v95_v43 }
  0x41   :  { %250 = vst [vmem:[#allocation7 + $0x190] sm:$0xff] %v186_v37  ;;  %251 = vst [vmem:[#allocation7 + $0x198] sm:$0xff] %v187_v40  ;;  %v192_v55 = vadd.f32 %v457_v14, %v96_v44  ;;  %v193_v58 = vadd.f32 %v460_v18, %v97_v47  ;;  %v98_v48 = vld [vmem:[#allocation2 + $0x1d0] sm:$0xff]  ;;  %v99_v60 = vld [vmem:[#allocation2 + $0x1d8] sm:$0xff] }
  0x42   :  { %v100_v50 = vld [vmem:[#allocation2 + $0x1e0] sm:$0xff]  ;;  %252 = vst [vmem:[#allocation7 + $0x1a0] sm:$0xff] %v188_v42  ;;  %253 = vst [vmem:[#allocation7 + $0x1a8] sm:$0xff] %v189_v46  ;;  %v194_v0 = vadd.f32 %v462_v21, %v98_v48  ;;  %v195_v5 = vadd.f32 %v466_v27, %v99_v60  ;;  %v101_v53 = vld [vmem:[#allocation2 + $0x1e8] sm:$0xff] }
  0x43   :  { %254 = vst [vmem:[#allocation7 + $0x1b0] sm:$0xff] %v190_v49  ;;  %v196_v52 = vadd.f32 %v469_v32, %v100_v50  ;;  %v102_v54 = vld [vmem:[#allocation2 + $0x1f0] sm:$0xff]  ;;  %v103_v56 = vld [vmem:[#allocation2 + $0x1f8] sm:$0xff]  ;;  %255 = vst [vmem:[#allocation7 + $0x1b8] sm:$0xff] %v191_v51  ;;  %v197_v8 = vadd.f32 %v471_v35, %v101_v53 }
  0x44   :  { %256 = vst [vmem:[#allocation7 + $0x1c0] sm:$0xff] %v192_v55  ;;  %257 = vst [vmem:[#allocation7 + $0x1c8] sm:$0xff] %v193_v58  ;;  %v198_v14 = vadd.f32 %v475_v41, %v102_v54  ;;  %v199_v18 = vadd.f32 %v478_v45, %v103_v56 }
  0x45   :  { %258 = vst [vmem:[#allocation7 + $0x1d0] sm:$0xff] %v194_v0  ;;  %259 = vst [vmem:[#allocation7 + $0x1d8] sm:$0xff] %v195_v5 }
  0x46   :  { %260 = vst [vmem:[#allocation7 + $0x1e0] sm:$0xff] %v196_v52  ;;  %261 = vst [vmem:[#allocation7 + $0x1e8] sm:$0xff] %v197_v8 }
  0x47   :  { %262 = vst [vmem:[#allocation7 + $0x1f0] sm:$0xff] %v198_v14  ;;  %263 = vst [vmem:[#allocation7 + $0x1f8] sm:$0xff] %v199_v18 }
  0x48   :  { %338 = shalt.err (!%p335_p0)
}
  0x49   :  { %275 = dma.vmem_to_hbm [thread:$0]  %s270_s1, 8192, %s521_s2, [#allocation4], %s354_s12, %s354_s12, %s355_s13  }
  0x4a   :  { %351 = dma.done.wait [#allocation4], 8192  }
  0x4b   :  { %352 = vsyncadd [#allocation4], 4294959104 }
  0x4c   :  { %279 = vsyncpa [#allocation3], 1 }
  0x4d   :  { %280 = vsyncpa [#allocation6], 1 }
  0x4e   :  { %281 = vsyncpa [#allocation4], 1 }

</bundles_post_ra>
